<compile_context>
chip_gen: v7x
topology: tpu7x:2x2x1
jax: 0.10.0
libtpu: 0.0.40
codegen_flags: <defaults>
</compile_context>

<pallas_src>
import functools
import math

import jax
import jax.numpy as jnp
from jax.experimental import pallas as pl
from jax.experimental.pallas import tpu as pltpu


def _attention_kernel(x_ref, wqkv_ref, bqkv_ref, wproj_ref, bproj_ref, o_ref,
                      qkv_ref, att_ref, *, n_head: int, batch: int, seq: int):
    # x_ref: (B*T, C) slab; weights are the full (small) matrices.
    BT, C = x_ref.shape
    hs = C // n_head

    # --- One batch-collapsed QKV projection: (B*T, C) @ (C, 3C) + bias. ---
    # (1/sqrt(hs) is already folded into the q columns of wqkv/bqkv.)
    qkv_ref[...] = (jnp.dot(x_ref[...], wqkv_ref[...],
                            preferred_element_type=jnp.float32)
                    + bqkv_ref[...])

    # Causal mask: position i attends to j <= i.
    row = jax.lax.broadcasted_iota(jnp.int32, (seq, seq), 0)
    col = jax.lax.broadcasted_iota(jnp.int32, (seq, seq), 1)
    causal = col <= row

    # --- Attention core per (batch, head): tiny 2-D MXU dots. ---
    for b in range(batch):
        r0 = b * seq
        qkv_b = qkv_ref[r0:r0 + seq, :]                   # (T, 3C)
        for h in range(n_head):
            qh = qkv_b[:, 0 * C + h * hs: 0 * C + (h + 1) * hs]   # (T, hs)
            kh = qkv_b[:, 1 * C + h * hs: 1 * C + (h + 1) * hs]
            vh = qkv_b[:, 2 * C + h * hs: 2 * C + (h + 1) * hs]

            # Scores (scale already folded into q).
            s = jnp.dot(qh, kh.T, preferred_element_type=jnp.float32)  # (T, T)
            s = jnp.where(causal, s, -jnp.inf)            # masked_fill(-inf)
            s = s - jnp.max(s, axis=-1, keepdims=True)
            p = jnp.exp(s)
            denom = jnp.sum(p, axis=-1, keepdims=True)
            p = p * pl.reciprocal(denom, approx=True)     # EUP, not VPU divide

            oh = jnp.dot(p, vh, preferred_element_type=jnp.float32)   # (T, hs)
            # Head-concat through VMEM scratch -> single projection matmul later.
            att_ref[r0:r0 + seq, h * hs:(h + 1) * hs] = oh

    # --- One output projection for the whole batch: (B*T, C) @ (C, C) + bias. ---
    y = jnp.dot(att_ref[...], wproj_ref[...],
                preferred_element_type=jnp.float32) + bproj_ref[...]
    o_ref[...] = y.astype(o_ref.dtype)


def simple_attention(x, w_qkv_t, b_qkv, w_proj_t, b_proj, n_head):
    """x: (B, T, C); w_qkv_t: (C, 3C); b_qkv: (1, 3C); w_proj_t: (C, C); b_proj: (1, C)."""
    B, T, C = x.shape
    hs = C // n_head
    scale = 1.0 / math.sqrt(hs)

    # Fold the attention scale into the q columns of the QKV projection
    # (wrapper-side layout/constant plumbing; removes per-score scaling).
    col_scale = jnp.concatenate([
        jnp.full((C,), scale, dtype=w_qkv_t.dtype),
        jnp.ones((2 * C,), dtype=w_qkv_t.dtype),
    ])
    w_qkv_s = w_qkv_t * col_scale[None, :]
    b_qkv_s = b_qkv * col_scale[None, :]

    # Collapse the batch into one lane/sublane-dense slab -> single grid step.
    x2 = x.reshape(B * T, C)

    kernel = functools.partial(_attention_kernel, n_head=n_head, batch=B, seq=T)
    out2 = pl.pallas_call(
        kernel,
        out_shape=jax.ShapeDtypeStruct((B * T, C), x.dtype),
        grid=(1,),
        in_specs=[
            pl.BlockSpec((B * T, C), lambda i: (0, 0)),
            pl.BlockSpec((C, 3 * C), lambda i: (0, 0)),
            pl.BlockSpec((1, 3 * C), lambda i: (0, 0)),
            pl.BlockSpec((C, C), lambda i: (0, 0)),
            pl.BlockSpec((1, C), lambda i: (0, 0)),
        ],
        out_specs=pl.BlockSpec((B * T, C), lambda i: (0, 0)),
        scratch_shapes=[
            pltpu.VMEM((B * T, 3 * C), jnp.float32),   # qkv
            pltpu.VMEM((B * T, C), jnp.float32),       # concatenated head outputs
        ],
        compiler_params=pltpu.CompilerParams(
            dimension_semantics=("arbitrary",)),
    )(x2, w_qkv_s, b_qkv_s, w_proj_t, b_proj)
    return out2.reshape(B, T, C)


def reference_attention(x, w_qkv_t, b_qkv, w_proj_t, b_proj, n_head):
    B, T, C = x.shape
    hs = C // n_head
    qkv = x @ w_qkv_t + b_qkv                               # (B, T, 3C)
    q, k, v = qkv[..., :C], qkv[..., C:2 * C], qkv[..., 2 * C:]
    q = q.reshape(B, T, n_head, hs).transpose(0, 2, 1, 3)
    k = k.reshape(B, T, n_head, hs).transpose(0, 2, 1, 3)
    v = v.reshape(B, T, n_head, hs).transpose(0, 2, 1, 3)
    s = jnp.einsum('bhqd,bhkd->bhqk', q, k) / math.sqrt(hs)
    mask = jnp.tril(jnp.ones((T, T), bool))
    s = jnp.where(mask, s, -jnp.inf)
    p = jax.nn.softmax(s, axis=-1)
    o = jnp.einsum('bhqk,bhkd->bhqd', p, v)
    o = o.transpose(0, 2, 1, 3).reshape(B, T, C)
    return o @ w_proj_t + b_proj


if __name__ == "__main__":
    n_embd, n_head = 6, 2      # head_size = 3
    B, T, C = 3, 4, n_embd

    # Input from the module's example tensor (deterministic).
    x = jnp.array(
        [[[1.0, 0.5, -0.2, 0.3, 0.1, -0.1],
          [0.2, 0.8, 0.3, -0.5, 0.4, 0.2],
          [-0.4, 0.1, 0.7, 0.2, -0.3, 0.5],
          [0.3, -0.2, 0.4, 0.1, 0.6, -0.3]],
         [[0.5, 0.2, 0.1, -0.3, 0.4, 0.2],
          [-0.1, 0.6, 0.3, 0.2, -0.2, 0.4],
          [0.3, -0.4, 0.5, 0.1, 0.3, -0.1],
          [0.2, 0.3, -0.1, 0.4, 0.5, 0.2]],
         [[0.4, 0.1, -0.3, 0.5, 0.2, 0.3],
          [-0.2, 0.4, 0.2, 0.1, 0.6, -0.1],
          [0.3, 0.5, 0.1, -0.2, 0.4, 0.2],
          [0.1, -0.3, 0.4, 0.3, 0.2, 0.5]]], dtype=jnp.float32)

    # Deterministic parameter init (PyTorch nn.Linear-style uniform bounds).
    key = jax.random.PRNGKey(0)
    k1, k2, k3, k4 = jax.random.split(key, 4)
    bound_attn = 1.0 / math.sqrt(n_embd)
    bound_proj = 1.0 / math.sqrt(n_embd)
    # Stored already transposed: y = x @ W_t + b
    w_qkv_t = jax.random.uniform(k1, (n_embd, 3 * n_embd), jnp.float32,
                                 -bound_attn, bound_attn)
    b_qkv = jax.random.uniform(k2, (1, 3 * n_embd), jnp.float32,
                               -bound_attn, bound_attn)
    w_proj_t = jax.random.uniform(k3, (n_embd, n_embd), jnp.float32,
                                  -bound_proj, bound_proj)
    b_proj = jax.random.uniform(k4, (1, n_embd), jnp.float32,
                                -bound_proj, bound_proj)

    out = simple_attention(x, w_qkv_t, b_qkv, w_proj_t, b_proj, n_head)
    out = jax.block_until_ready(out)

    ref = reference_attention(x, w_qkv_t, b_qkv, w_proj_t, b_proj, n_head)
    assert out.shape == (B, T, C)
    # Slightly relaxed tolerance: approx reciprocal (EUP) in the softmax
    # normalization introduces ~1e-4 relative error.
    assert jnp.allclose(out, ref, atol=1e-3, rtol=1e-3), "mismatch vs reference"

    print("KERNEL_OK")
</pallas_src>

<mosaic_0001>
module attributes {stable_mosaic.version = 11 : i64} {
  func.func @_attention_kernel(%arg0: i32, %arg1: memref<12x6xf32, #tpu.memory_space<vmem>>, %arg2: memref<6x18xf32, #tpu.memory_space<vmem>>, %arg3: memref<1x18xf32, #tpu.memory_space<vmem>>, %arg4: memref<6x6xf32, #tpu.memory_space<vmem>>, %arg5: memref<1x6xf32, #tpu.memory_space<vmem>>, %arg6: memref<12x6xf32, #tpu.memory_space<vmem>>, %arg7: memref<12x18xf32, #tpu.memory_space<vmem>>, %arg8: memref<12x6xf32, #tpu.memory_space<vmem>>) attributes {dimension_semantics = [#tpu.dimension_semantics<arbitrary>], iteration_bounds = array<i64: 1>, scalar_prefetch = 0 : i64, scratch_operands = 2 : i64, tpu.core_type = #tpu.core_type<tc>, window_params = [{pipeline_mode = #tpu.pipeline_mode<synchronous>, transform_indices = @transform_0, window_bounds = array<i64: 12, 6>}, {pipeline_mode = #tpu.pipeline_mode<synchronous>, transform_indices = @transform_1, window_bounds = array<i64: 6, 18>}, {pipeline_mode = #tpu.pipeline_mode<synchronous>, transform_indices = @transform_2, window_bounds = array<i64: 1, 18>}, {pipeline_mode = #tpu.pipeline_mode<synchronous>, transform_indices = @transform_3, window_bounds = array<i64: 6, 6>}, {pipeline_mode = #tpu.pipeline_mode<synchronous>, transform_indices = @transform_4, window_bounds = array<i64: 1, 6>}, {pipeline_mode = #tpu.pipeline_mode<synchronous>, transform_indices = @transform_5, window_bounds = array<i64: 12, 6>}]} {
    %c0 = arith.constant 0 : index
    %c0_0 = arith.constant 0 : index
    %0 = vector.load %arg1[%c0, %c0_0] : memref<12x6xf32, #tpu.memory_space<vmem>>, vector<12x6xf32>
    %c0_1 = arith.constant 0 : index
    %c0_2 = arith.constant 0 : index
    %1 = vector.load %arg2[%c0_1, %c0_2] : memref<6x18xf32, #tpu.memory_space<vmem>>, vector<6x18xf32>
    %cst = arith.constant dense<0.000000e+00> : vector<12x18xf32>
    %2 = tpu.matmul %0, %1, %cst {dimension_numbers = #tpu.dot_dimension_numbers<[1], [0], [0], [1], [0, 0, 1, 1], [], []>} : vector<12x6xf32>, vector<6x18xf32>, vector<12x18xf32> -> vector<12x18xf32>
    %c0_3 = arith.constant 0 : index
    %c0_4 = arith.constant 0 : index
    %3 = vector.load %arg3[%c0_3, %c0_4] : memref<1x18xf32, #tpu.memory_space<vmem>>, vector<1x18xf32>
    %4 = vector.broadcast %3 : vector<1x18xf32> to vector<12x18xf32>
    %5 = arith.addf %2, %4 : vector<12x18xf32>
    %c0_5 = arith.constant 0 : index
    %c0_6 = arith.constant 0 : index
    %6 = vector.load %arg7[%c0_5, %c0_6] : memref<12x18xf32, #tpu.memory_space<vmem>>, vector<12x18xf32>
    tpu.vector_store %arg7[%c0_5, %c0_6], %5 {strides = array<i32>} : memref<12x18xf32, #tpu.memory_space<vmem>>, vector<12x18xf32>,
    %7 = tpu.iota {dimensions = array<i32: 0>} : vector<4x4xi32>
    %8 = tpu.iota {dimensions = array<i32: 1>} : vector<4x4xi32>
    %9 = arith.cmpi sle, %8, %7 : vector<4x4xi32>
    %c0_7 = arith.constant 0 : index
    %c0_8 = arith.constant 0 : index
    %10 = vector.load %arg7[%c0_7, %c0_8] : memref<12x18xf32, #tpu.memory_space<vmem>>, vector<4x18xf32>
    %11 = vector.extract_strided_slice %10 {offsets = [0, 0], sizes = [4, 3], strides = [1, 1]} : vector<4x18xf32> to vector<4x3xf32>
    %12 = vector.extract_strided_slice %10 {offsets = [0, 6], sizes = [4, 3], strides = [1, 1]} : vector<4x18xf32> to vector<4x3xf32>
    %13 = vector.extract_strided_slice %10 {offsets = [0, 12], sizes = [4, 3], strides = [1, 1]} : vector<4x18xf32> to vector<4x3xf32>
    %14 = tpu.transpose %12, [1, 0] : vector<4x3xf32> -> vector<3x4xf32>
    %cst_9 = arith.constant dense<0.000000e+00> : vector<4x4xf32>
    %15 = tpu.matmul %11, %14, %cst_9 {dimension_numbers = #tpu.dot_dimension_numbers<[1], [0], [0], [1], [0, 0, 1, 1], [], []>} : vector<4x3xf32>, vector<3x4xf32>, vector<4x4xf32> -> vector<4x4xf32>
    %cst_10 = arith.constant 0xFF800000 : f32
    %16 = vector.broadcast %cst_10 : f32 to vector<4x4xf32>
    %17 = arith.select %9, %15, %16 : vector<4x4xi1>, vector<4x4xf32>
    %cst_11 = arith.constant dense<0xFF800000> : vector<4xf32>
    %18 = vector.multi_reduction <maximumf>, %17, %cst_11 [1] : vector<4x4xf32> to vector<4xf32>
    %19 = vector.shape_cast %18 : vector<4xf32> to vector<4x1xf32>
    %20 = vector.broadcast %19 : vector<4x1xf32> to vector<4x4xf32>
    %21 = arith.subf %17, %20 : vector<4x4xf32>
    %22 = math.exp %21 : vector<4x4xf32>
    %cst_12 = arith.constant dense<0.000000e+00> : vector<4xf32>
    %23 = vector.multi_reduction <add>, %22, %cst_12 [1] : vector<4x4xf32> to vector<4xf32>
    %24 = vector.shape_cast %23 : vector<4xf32> to vector<4x1xf32>
    %25 = tpu.reciprocal %24 {approx = true} : vector<4x1xf32> -> vector<4x1xf32>
    %26 = vector.broadcast %25 : vector<4x1xf32> to vector<4x4xf32>
    %27 = arith.mulf %22, %26 : vector<4x4xf32>
    %cst_13 = arith.constant dense<0.000000e+00> : vector<4x3xf32>
    %28 = tpu.matmul %27, %13, %cst_13 {dimension_numbers = #tpu.dot_dimension_numbers<[1], [0], [0], [1], [0, 0, 1, 1], [], []>} : vector<4x4xf32>, vector<4x3xf32>, vector<4x3xf32> -> vector<4x3xf32>
    %c0_14 = arith.constant 0 : index
    %c0_15 = arith.constant 0 : index
    %29 = vector.load %arg8[%c0_14, %c0_15] : memref<12x6xf32, #tpu.memory_space<vmem>>, vector<4x3xf32>
    tpu.vector_store %arg8[%c0_14, %c0_15], %28 {strides = array<i32>} : memref<12x6xf32, #tpu.memory_space<vmem>>, vector<4x3xf32>,
    %30 = vector.extract_strided_slice %10 {offsets = [0, 3], sizes = [4, 3], strides = [1, 1]} : vector<4x18xf32> to vector<4x3xf32>
    %31 = vector.extract_strided_slice %10 {offsets = [0, 9], sizes = [4, 3], strides = [1, 1]} : vector<4x18xf32> to vector<4x3xf32>
    %32 = vector.extract_strided_slice %10 {offsets = [0, 15], sizes = [4, 3], strides = [1, 1]} : vector<4x18xf32> to vector<4x3xf32>
    %33 = tpu.transpose %31, [1, 0] : vector<4x3xf32> -> vector<3x4xf32>
    %cst_16 = arith.constant dense<0.000000e+00> : vector<4x4xf32>
    %34 = tpu.matmul %30, %33, %cst_16 {dimension_numbers = #tpu.dot_dimension_numbers<[1], [0], [0], [1], [0, 0, 1, 1], [], []>} : vector<4x3xf32>, vector<3x4xf32>, vector<4x4xf32> -> vector<4x4xf32>
    %cst_17 = arith.constant 0xFF800000 : f32
    %35 = vector.broadcast %cst_17 : f32 to vector<4x4xf32>
    %36 = arith.select %9, %34, %35 : vector<4x4xi1>, vector<4x4xf32>
    %cst_18 = arith.constant dense<0xFF800000> : vector<4xf32>
    %37 = vector.multi_reduction <maximumf>, %36, %cst_18 [1] : vector<4x4xf32> to vector<4xf32>
    %38 = vector.shape_cast %37 : vector<4xf32> to vector<4x1xf32>
    %39 = vector.broadcast %38 : vector<4x1xf32> to vector<4x4xf32>
    %40 = arith.subf %36, %39 : vector<4x4xf32>
    %41 = math.exp %40 : vector<4x4xf32>
    %cst_19 = arith.constant dense<0.000000e+00> : vector<4xf32>
    %42 = vector.multi_reduction <add>, %41, %cst_19 [1] : vector<4x4xf32> to vector<4xf32>
    %43 = vector.shape_cast %42 : vector<4xf32> to vector<4x1xf32>
    %44 = tpu.reciprocal %43 {approx = true} : vector<4x1xf32> -> vector<4x1xf32>
    %45 = vector.broadcast %44 : vector<4x1xf32> to vector<4x4xf32>
    %46 = arith.mulf %41, %45 : vector<4x4xf32>
    %cst_20 = arith.constant dense<0.000000e+00> : vector<4x3xf32>
    %47 = tpu.matmul %46, %32, %cst_20 {dimension_numbers = #tpu.dot_dimension_numbers<[1], [0], [0], [1], [0, 0, 1, 1], [], []>} : vector<4x4xf32>, vector<4x3xf32>, vector<4x3xf32> -> vector<4x3xf32>
    %c0_21 = arith.constant 0 : index
    %c3 = arith.constant 3 : index
    %48 = vector.load %arg8[%c0_21, %c3] : memref<12x6xf32, #tpu.memory_space<vmem>>, vector<4x3xf32>
    tpu.vector_store %arg8[%c0_21, %c3], %47 {strides = array<i32>} : memref<12x6xf32, #tpu.memory_space<vmem>>, vector<4x3xf32>,
    %c4 = arith.constant 4 : index
    %c0_22 = arith.constant 0 : index
    %49 = vector.load %arg7[%c4, %c0_22] : memref<12x18xf32, #tpu.memory_space<vmem>>, vector<4x18xf32>
    %50 = vector.extract_strided_slice %49 {offsets = [0, 0], sizes = [4, 3], strides = [1, 1]} : vector<4x18xf32> to vector<4x3xf32>
    %51 = vector.extract_strided_slice %49 {offsets = [0, 6], sizes = [4, 3], strides = [1, 1]} : vector<4x18xf32> to vector<4x3xf32>
    %52 = vector.extract_strided_slice %49 {offsets = [0, 12], sizes = [4, 3], strides = [1, 1]} : vector<4x18xf32> to vector<4x3xf32>
    %53 = tpu.transpose %51, [1, 0] : vector<4x3xf32> -> vector<3x4xf32>
    %cst_23 = arith.constant dense<0.000000e+00> : vector<4x4xf32>
    %54 = tpu.matmul %50, %53, %cst_23 {dimension_numbers = #tpu.dot_dimension_numbers<[1], [0], [0], [1], [0, 0, 1, 1], [], []>} : vector<4x3xf32>, vector<3x4xf32>, vector<4x4xf32> -> vector<4x4xf32>
    %cst_24 = arith.constant 0xFF800000 : f32
    %55 = vector.broadcast %cst_24 : f32 to vector<4x4xf32>
    %56 = arith.select %9, %54, %55 : vector<4x4xi1>, vector<4x4xf32>
    %cst_25 = arith.constant dense<0xFF800000> : vector<4xf32>
    %57 = vector.multi_reduction <maximumf>, %56, %cst_25 [1] : vector<4x4xf32> to vector<4xf32>
    %58 = vector.shape_cast %57 : vector<4xf32> to vector<4x1xf32>
    %59 = vector.broadcast %58 : vector<4x1xf32> to vector<4x4xf32>
    %60 = arith.subf %56, %59 : vector<4x4xf32>
    %61 = math.exp %60 : vector<4x4xf32>
    %cst_26 = arith.constant dense<0.000000e+00> : vector<4xf32>
    %62 = vector.multi_reduction <add>, %61, %cst_26 [1] : vector<4x4xf32> to vector<4xf32>
    %63 = vector.shape_cast %62 : vector<4xf32> to vector<4x1xf32>
    %64 = tpu.reciprocal %63 {approx = true} : vector<4x1xf32> -> vector<4x1xf32>
    %65 = vector.broadcast %64 : vector<4x1xf32> to vector<4x4xf32>
    %66 = arith.mulf %61, %65 : vector<4x4xf32>
    %cst_27 = arith.constant dense<0.000000e+00> : vector<4x3xf32>
    %67 = tpu.matmul %66, %52, %cst_27 {dimension_numbers = #tpu.dot_dimension_numbers<[1], [0], [0], [1], [0, 0, 1, 1], [], []>} : vector<4x4xf32>, vector<4x3xf32>, vector<4x3xf32> -> vector<4x3xf32>
    %c4_28 = arith.constant 4 : index
    %c0_29 = arith.constant 0 : index
    %68 = vector.load %arg8[%c4_28, %c0_29] : memref<12x6xf32, #tpu.memory_space<vmem>>, vector<4x3xf32>
    tpu.vector_store %arg8[%c4_28, %c0_29], %67 {strides = array<i32>} : memref<12x6xf32, #tpu.memory_space<vmem>>, vector<4x3xf32>,
    %69 = vector.extract_strided_slice %49 {offsets = [0, 3], sizes = [4, 3], strides = [1, 1]} : vector<4x18xf32> to vector<4x3xf32>
    %70 = vector.extract_strided_slice %49 {offsets = [0, 9], sizes = [4, 3], strides = [1, 1]} : vector<4x18xf32> to vector<4x3xf32>
    %71 = vector.extract_strided_slice %49 {offsets = [0, 15], sizes = [4, 3], strides = [1, 1]} : vector<4x18xf32> to vector<4x3xf32>
    %72 = tpu.transpose %70, [1, 0] : vector<4x3xf32> -> vector<3x4xf32>
    %cst_30 = arith.constant dense<0.000000e+00> : vector<4x4xf32>
    %73 = tpu.matmul %69, %72, %cst_30 {dimension_numbers = #tpu.dot_dimension_numbers<[1], [0], [0], [1], [0, 0, 1, 1], [], []>} : vector<4x3xf32>, vector<3x4xf32>, vector<4x4xf32> -> vector<4x4xf32>
    %cst_31 = arith.constant 0xFF800000 : f32
    %74 = vector.broadcast %cst_31 : f32 to vector<4x4xf32>
    %75 = arith.select %9, %73, %74 : vector<4x4xi1>, vector<4x4xf32>
    %cst_32 = arith.constant dense<0xFF800000> : vector<4xf32>
    %76 = vector.multi_reduction <maximumf>, %75, %cst_32 [1] : vector<4x4xf32> to vector<4xf32>
    %77 = vector.shape_cast %76 : vector<4xf32> to vector<4x1xf32>
    %78 = vector.broadcast %77 : vector<4x1xf32> to vector<4x4xf32>
    %79 = arith.subf %75, %78 : vector<4x4xf32>
    %80 = math.exp %79 : vector<4x4xf32>
    %cst_33 = arith.constant dense<0.000000e+00> : vector<4xf32>
    %81 = vector.multi_reduction <add>, %80, %cst_33 [1] : vector<4x4xf32> to vector<4xf32>
    %82 = vector.shape_cast %81 : vector<4xf32> to vector<4x1xf32>
    %83 = tpu.reciprocal %82 {approx = true} : vector<4x1xf32> -> vector<4x1xf32>
    %84 = vector.broadcast %83 : vector<4x1xf32> to vector<4x4xf32>
    %85 = arith.mulf %80, %84 : vector<4x4xf32>
    %cst_34 = arith.constant dense<0.000000e+00> : vector<4x3xf32>
    %86 = tpu.matmul %85, %71, %cst_34 {dimension_numbers = #tpu.dot_dimension_numbers<[1], [0], [0], [1], [0, 0, 1, 1], [], []>} : vector<4x4xf32>, vector<4x3xf32>, vector<4x3xf32> -> vector<4x3xf32>
    %c4_35 = arith.constant 4 : index
    %c3_36 = arith.constant 3 : index
    %87 = vector.load %arg8[%c4_35, %c3_36] : memref<12x6xf32, #tpu.memory_space<vmem>>, vector<4x3xf32>
    tpu.vector_store %arg8[%c4_35, %c3_36], %86 {strides = array<i32>} : memref<12x6xf32, #tpu.memory_space<vmem>>, vector<4x3xf32>,
    %c8 = arith.constant 8 : index
    %c0_37 = arith.constant 0 : index
    %88 = vector.load %arg7[%c8, %c0_37] : memref<12x18xf32, #tpu.memory_space<vmem>>, vector<4x18xf32>
    %89 = vector.extract_strided_slice %88 {offsets = [0, 0], sizes = [4, 3], strides = [1, 1]} : vector<4x18xf32> to vector<4x3xf32>
    %90 = vector.extract_strided_slice %88 {offsets = [0, 6], sizes = [4, 3], strides = [1, 1]} : vector<4x18xf32> to vector<4x3xf32>
    %91 = vector.extract_strided_slice %88 {offsets = [0, 12], sizes = [4, 3], strides = [1, 1]} : vector<4x18xf32> to vector<4x3xf32>
    %92 = tpu.transpose %90, [1, 0] : vector<4x3xf32> -> vector<3x4xf32>
    %cst_38 = arith.constant dense<0.000000e+00> : vector<4x4xf32>
    %93 = tpu.matmul %89, %92, %cst_38 {dimension_numbers = #tpu.dot_dimension_numbers<[1], [0], [0], [1], [0, 0, 1, 1], [], []>} : vector<4x3xf32>, vector<3x4xf32>, vector<4x4xf32> -> vector<4x4xf32>
    %cst_39 = arith.constant 0xFF800000 : f32
    %94 = vector.broadcast %cst_39 : f32 to vector<4x4xf32>
    %95 = arith.select %9, %93, %94 : vector<4x4xi1>, vector<4x4xf32>
    %cst_40 = arith.constant dense<0xFF800000> : vector<4xf32>
    %96 = vector.multi_reduction <maximumf>, %95, %cst_40 [1] : vector<4x4xf32> to vector<4xf32>
    %97 = vector.shape_cast %96 : vector<4xf32> to vector<4x1xf32>
    %98 = vector.broadcast %97 : vector<4x1xf32> to vector<4x4xf32>
    %99 = arith.subf %95, %98 : vector<4x4xf32>
    %100 = math.exp %99 : vector<4x4xf32>
    %cst_41 = arith.constant dense<0.000000e+00> : vector<4xf32>
    %101 = vector.multi_reduction <add>, %100, %cst_41 [1] : vector<4x4xf32> to vector<4xf32>
    %102 = vector.shape_cast %101 : vector<4xf32> to vector<4x1xf32>
    %103 = tpu.reciprocal %102 {approx = true} : vector<4x1xf32> -> vector<4x1xf32>
    %104 = vector.broadcast %103 : vector<4x1xf32> to vector<4x4xf32>
    %105 = arith.mulf %100, %104 : vector<4x4xf32>
    %cst_42 = arith.constant dense<0.000000e+00> : vector<4x3xf32>
    %106 = tpu.matmul %105, %91, %cst_42 {dimension_numbers = #tpu.dot_dimension_numbers<[1], [0], [0], [1], [0, 0, 1, 1], [], []>} : vector<4x4xf32>, vector<4x3xf32>, vector<4x3xf32> -> vector<4x3xf32>
    %c8_43 = arith.constant 8 : index
    %c0_44 = arith.constant 0 : index
    %107 = vector.load %arg8[%c8_43, %c0_44] : memref<12x6xf32, #tpu.memory_space<vmem>>, vector<4x3xf32>
    tpu.vector_store %arg8[%c8_43, %c0_44], %106 {strides = array<i32>} : memref<12x6xf32, #tpu.memory_space<vmem>>, vector<4x3xf32>,
    %108 = vector.extract_strided_slice %88 {offsets = [0, 3], sizes = [4, 3], strides = [1, 1]} : vector<4x18xf32> to vector<4x3xf32>
    %109 = vector.extract_strided_slice %88 {offsets = [0, 9], sizes = [4, 3], strides = [1, 1]} : vector<4x18xf32> to vector<4x3xf32>
    %110 = vector.extract_strided_slice %88 {offsets = [0, 15], sizes = [4, 3], strides = [1, 1]} : vector<4x18xf32> to vector<4x3xf32>
    %111 = tpu.transpose %109, [1, 0] : vector<4x3xf32> -> vector<3x4xf32>
    %cst_45 = arith.constant dense<0.000000e+00> : vector<4x4xf32>
    %112 = tpu.matmul %108, %111, %cst_45 {dimension_numbers = #tpu.dot_dimension_numbers<[1], [0], [0], [1], [0, 0, 1, 1], [], []>} : vector<4x3xf32>, vector<3x4xf32>, vector<4x4xf32> -> vector<4x4xf32>
    %cst_46 = arith.constant 0xFF800000 : f32
    %113 = vector.broadcast %cst_46 : f32 to vector<4x4xf32>
    %114 = arith.select %9, %112, %113 : vector<4x4xi1>, vector<4x4xf32>
    %cst_47 = arith.constant dense<0xFF800000> : vector<4xf32>
    %115 = vector.multi_reduction <maximumf>, %114, %cst_47 [1] : vector<4x4xf32> to vector<4xf32>
    %116 = vector.shape_cast %115 : vector<4xf32> to vector<4x1xf32>
    %117 = vector.broadcast %116 : vector<4x1xf32> to vector<4x4xf32>
    %118 = arith.subf %114, %117 : vector<4x4xf32>
    %119 = math.exp %118 : vector<4x4xf32>
    %cst_48 = arith.constant dense<0.000000e+00> : vector<4xf32>
    %120 = vector.multi_reduction <add>, %119, %cst_48 [1] : vector<4x4xf32> to vector<4xf32>
    %121 = vector.shape_cast %120 : vector<4xf32> to vector<4x1xf32>
    %122 = tpu.reciprocal %121 {approx = true} : vector<4x1xf32> -> vector<4x1xf32>
    %123 = vector.broadcast %122 : vector<4x1xf32> to vector<4x4xf32>
    %124 = arith.mulf %119, %123 : vector<4x4xf32>
    %cst_49 = arith.constant dense<0.000000e+00> : vector<4x3xf32>
    %125 = tpu.matmul %124, %110, %cst_49 {dimension_numbers = #tpu.dot_dimension_numbers<[1], [0], [0], [1], [0, 0, 1, 1], [], []>} : vector<4x4xf32>, vector<4x3xf32>, vector<4x3xf32> -> vector<4x3xf32>
    %c8_50 = arith.constant 8 : index
    %c3_51 = arith.constant 3 : index
    %126 = vector.load %arg8[%c8_50, %c3_51] : memref<12x6xf32, #tpu.memory_space<vmem>>, vector<4x3xf32>
    tpu.vector_store %arg8[%c8_50, %c3_51], %125 {strides = array<i32>} : memref<12x6xf32, #tpu.memory_space<vmem>>, vector<4x3xf32>,
    %c0_52 = arith.constant 0 : index
    %c0_53 = arith.constant 0 : index
    %127 = vector.load %arg8[%c0_52, %c0_53] : memref<12x6xf32, #tpu.memory_space<vmem>>, vector<12x6xf32>
    %c0_54 = arith.constant 0 : index
    %c0_55 = arith.constant 0 : index
    %128 = vector.load %arg4[%c0_54, %c0_55] : memref<6x6xf32, #tpu.memory_space<vmem>>, vector<6x6xf32>
    %cst_56 = arith.constant dense<0.000000e+00> : vector<12x6xf32>
    %129 = tpu.matmul %127, %128, %cst_56 {dimension_numbers = #tpu.dot_dimension_numbers<[1], [0], [0], [1], [0, 0, 1, 1], [], []>} : vector<12x6xf32>, vector<6x6xf32>, vector<12x6xf32> -> vector<12x6xf32>
    %c0_57 = arith.constant 0 : index
    %c0_58 = arith.constant 0 : index
    %130 = vector.load %arg5[%c0_57, %c0_58] : memref<1x6xf32, #tpu.memory_space<vmem>>, vector<1x6xf32>
    %131 = vector.broadcast %130 : vector<1x6xf32> to vector<12x6xf32>
    %132 = arith.addf %129, %131 : vector<12x6xf32>
    %c0_59 = arith.constant 0 : index
    %c0_60 = arith.constant 0 : index
    %133 = vector.load %arg6[%c0_59, %c0_60] : memref<12x6xf32, #tpu.memory_space<vmem>>, vector<12x6xf32>
    tpu.vector_store %arg6[%c0_59, %c0_60], %132 {strides = array<i32>} : memref<12x6xf32, #tpu.memory_space<vmem>>, vector<12x6xf32>,
    return
  }
  func.func @transform_0(%arg0: i32) -> (i32, i32) {
    %c0_i32 = arith.constant 0 : i32
    %c0_i32_0 = arith.constant 0 : i32
    %c0_i32_1 = arith.constant 0 : i32
    return %c0_i32, %c0_i32_0 : i32, i32
  }
  func.func @transform_1(%arg0: i32) -> (i32, i32) {
    %c0_i32 = arith.constant 0 : i32
    %c0_i32_0 = arith.constant 0 : i32
    %c0_i32_1 = arith.constant 0 : i32
    return %c0_i32, %c0_i32_0 : i32, i32
  }
  func.func @transform_2(%arg0: i32) -> (i32, i32) {
    %c0_i32 = arith.constant 0 : i32
    %c0_i32_0 = arith.constant 0 : i32
    %c0_i32_1 = arith.constant 0 : i32
    return %c0_i32, %c0_i32_0 : i32, i32
  }
  func.func @transform_3(%arg0: i32) -> (i32, i32) {
    %c0_i32 = arith.constant 0 : i32
    %c0_i32_0 = arith.constant 0 : i32
    %c0_i32_1 = arith.constant 0 : i32
    return %c0_i32, %c0_i32_0 : i32, i32
  }
  func.func @transform_4(%arg0: i32) -> (i32, i32) {
    %c0_i32 = arith.constant 0 : i32
    %c0_i32_0 = arith.constant 0 : i32
    %c0_i32_1 = arith.constant 0 : i32
    return %c0_i32, %c0_i32_0 : i32, i32
  }
  func.func @transform_5(%arg0: i32) -> (i32, i32) {
    %c0_i32 = arith.constant 0 : i32
    %c0_i32_0 = arith.constant 0 : i32
    %c0_i32_1 = arith.constant 0 : i32
    return %c0_i32, %c0_i32_0 : i32, i32
  }
}

</mosaic_0001>

<bundles_post_ra>
// kernel: tpu_custom_call.1
= control target key start
LH: loop header
LB: loop body
LE: loop exit
PB: predicated region body
PF: predicated region fallthrough
CT: control target
= control target key end

     0   :  { %vm37_vm0 = vcmask 1045504   ;;  %vm30_vm1 = vcmask 48128   ;;  %v1416_v3 = vmov 0.0   ;;  %vm118_vm2 = vcmask 142336   ;;  %s1420_s25 = smov 119   ;;  %s1421_s26 = smov 113   ;;  %s1608_s1 = inlined_call_operand.vmem [shape: f32[6,18], index: 1, kind: input, shape index: {}]   ;;  %s1609_s0 = inlined_call_operand.vmem [shape: f32[12,6], index: 0, kind: input, shape index: {}]   ;;  %s1610_s2 = inlined_call_operand.vmem [shape: f32[1,18], index: 2, kind: input, shape index: {}]   ;;  %s1611_s3 = inlined_call_operand.vmem [shape: f32[6,6], index: 3, kind: input, shape index: {}]   ;;  %s1612_s4 = inlined_call_operand.vmem [shape: f32[1,6], index: 4, kind: input, shape index: {}]   ;;  %s1613_s5 = inlined_call_operand.vmem [shape: f32[12,6], index: 5, kind: output, shape index: {}]  }
   0x1   :  { %v22_v0 = vld [vmem:[%s1608_s1] sm:$0x3f]  ;;  %v21_v2 = vld [vmem:[%s1609_s0 + $0x8] sm:$0xf]  ;;  %1319 = vmatprep.subr.mxu1 %v1416_v3  ;;  %vm1417_vm3 = vmmov 0   ;;  %vm116_vm4 = vcmask 146432   ;;  %v120_v21 = vlaneseq }
   0x2   :  { %v20_v1 = vld [vmem:[%s1609_s0] sm:$0xff]  ;;  %1314 = vmatprep.subr.msk.mxu0 %vm37_vm0, %v22_v0  ;;  %1321 = vmatprep.mubr.msk.f32.mxu1 %vm1417_vm3, %v1416_v3  ;;  %s1418_s0 = smov 125   ;;  %vm129_vm5 = vcmask 23552   ;;  %vm205_vm7 = vcmask 27648   ;;  %s1422_s27 = smov 116   ;;  %vm223_vm8 = vcmask 1043456  }
   0x3   :  { %1316 = vmatprep.mubr.msk.f32.mxu0 %vm30_vm1, %v20_v1  ;;  %1315 = vmatpush3.msk.msra.mxu0 %vm37_vm0, %v22_v0  ;;  %v1252_v4 = vld [vmem:[%s1610_s2] ss:$0 sm:$0xff]  ;;  %s1419_s2 = smov 122   ;;  %v121_v22 = vshrl.u32 %v120_v21, 7  ;;  %v123_v23 = vand.u32 127, %v120_v21  ;;  %vm219_vm9 = vcmask 31744  }
   0x4   :  { %1317 = vmatmul.mubr.msk.f32.vlgmr.msra.gmra.mrb[0].mxu0 %vm30_vm1, %v21_v2  ;;  %1324 = vmatprep.subr.mxu0 %v1416_v3  ;;  %vm296_vm10 = vcmask 19456   ;;  %s1423_s28 = smov 3   ;;  %vm469_vm11 = vcmask 44056   ;;  %vm1246_vm12 = vcmask 44032  }
   0x5   :  { %1326 = vmatprep.mubr.msk.f32.mxu0 %vm1417_vm3, %v1416_v3  ;;  %vm1521_vm6 = vcmp.le.s32.totalorder %v123_v23, %v121_v22 }
  0xd7   :  { %v1318_v5 = vpop.f32.mrb[0].mxu0 }
  0xd8   :  { %v113_v6 = vadd.f32 %v1318_v5, %v1252_v4  ;;  %v107_v7 = vpop.f32.mrb[1].mxu0 }
  0xd9   :  { %v108_v8 = vadd.f32 %v1252_v4, %v107_v7 }
  0xda   :  { %119 = vst.msk [vmem:[#allocation2 + $0x8] sm:$0xf] %vm118_vm2, %v113_v6 }
  0xdb   :  { %117 = vst.msk [vmem:[#allocation2] sm:$0xff] %vm116_vm4, %v108_v8 }
  0xe1   :  { %v1486_v11 = vld [vmem:[#allocation2 + $0x8] sm:$0xf] }
  0xe2   :  { %v1476_v9 = vld [vmem:[#allocation2] sm:$0xf]  ;;  %v1480_v10 = vld [vmem:[#allocation2 + $0x4] sm:$0xf] }
  0xe3   :  { %298 = vrot.lane.b32.xlu1 %v1476_v9, %s1418_s0  ;;  %127 = vrot.lane.b32.xlu0 %v1476_v9, %s1419_s2 }
  0xe7   :  { %473 = vrot.lane.b32.xlu1 %v1480_v10, %s1419_s2  ;;  %300 = vrot.lane.b32.xlu0 %v1476_v9, %s1420_s25 }
  0xeb   :  { %639 = vrot.lane.b32.xlu1 %v1480_v10, %s1418_s0  ;;  %641 = vrot.lane.b32.xlu0 %v1480_v10, %s1420_s25 }
  0xef   :  { %981 = vrot.lane.b32.xlu1 %v1486_v11, %s1420_s25  ;;  %813 = vrot.lane.b32.xlu0 %v1486_v11, %s1419_s2 }
  0xf3   :  { %979 = vrot.lane.b32.xlu0 %v1486_v11, %s1418_s0 }
 0x155   :  { %v128_v12 = vpop.permute.xlu0 %127  ;;  %v299_v13 = vpop.permute.xlu1 %298 }
 0x156   :  { %1320 = vmatpush3.xpose.msk.msra.mxu1 %vm129_vm5, %v128_v12 }
 0x157   :  { %1329 = vmatprep.subr.mxu1 %v1416_v3 }
 0x159   :  { %1322 = vmatmul.mubr.msk.f32.vlgmr.msra.gmra.mrb[0].mxu1 %vm129_vm5, %v1476_v9  ;;  %v301_v14 = vpop.permute.xlu0 %300  ;;  %v474_v15 = vpop.permute.xlu1 %473 }
 0x15a   :  { %1330 = vmatpush3.xpose.msk.msra.mxu1 %vm129_vm5, %v301_v14  ;;  %1331 = vmatprep.mubr.msk.f32.mxu1 %vm1417_vm3, %v1416_v3 }
 0x15b   :  { %1339 = vmatprep.subr.mxu1 %v1416_v3 }
 0x15d   :  { %1332 = vmatmul.mubr.msk.f32.vlgmr.msra.gmra.mrb[2].mxu1 %vm129_vm5, %v299_v13  ;;  %v642_v16 = vpop.permute.xlu0 %641  ;;  %v640_v17 = vpop.permute.xlu1 %639 }
 0x15e   :  { %1340 = vmatpush3.xpose.msk.msra.mxu1 %vm129_vm5, %v474_v15  ;;  %1341 = vmatprep.mubr.msk.f32.mxu1 %vm1417_vm3, %v1416_v3 }
 0x15f   :  { %1349 = vmatprep.subr.mxu1 %v1416_v3 }
 0x161   :  { %1342 = vmatmul.mubr.msk.f32.vlgmr.msra.gmra.mrb[4].mxu1 %vm129_vm5, %v1480_v10  ;;  %v814_v18 = vpop.permute.xlu0 %813  ;;  %v982_v19 = vpop.permute.xlu1 %981 }
 0x162   :  { %1350 = vmatpush3.xpose.msk.msra.mxu1 %vm129_vm5, %v642_v16  ;;  %1351 = vmatprep.mubr.msk.f32.mxu1 %vm1417_vm3, %v1416_v3 }
 0x163   :  { %1359 = vmatprep.subr.mxu1 %v1416_v3 }
 0x165   :  { %1352 = vmatmul.mubr.msk.f32.vlgmr.msra.gmra.mrb[6].mxu1 %vm129_vm5, %v640_v17  ;;  %v980_v20 = vpop.permute.xlu0 %979 }
 0x166   :  { %1360 = vmatpush3.xpose.msk.msra.mxu1 %vm129_vm5, %v814_v18  ;;  %1361 = vmatprep.mubr.msk.f32.mxu1 %vm1417_vm3, %v1416_v3 }
 0x167   :  { %1369 = vmatprep.subr.mxu1 %v1416_v3 }
 0x169   :  { %1362 = vmatmul.mubr.msk.f32.vlgmr.msra.gmra.mrb[8].mxu1 %vm129_vm5, %v1486_v11 }
 0x16a   :  { %1370 = vmatpush3.xpose.msk.msra.mxu1 %vm129_vm5, %v982_v19  ;;  %1371 = vmatprep.mubr.msk.f32.mxu1 %vm1417_vm3, %v1416_v3 }
 0x16d   :  { %1372 = vmatmul.mubr.msk.f32.vlgmr.msra.gmra.mrb[10].mxu1 %vm129_vm5, %v980_v20 }
 0x22c   :  { %v200_v25 = vpop.f32.mrb[0].mxu1 }
 0x22d   :  { %v204_v26 = vsel %vm1521_vm6, %v200_v25, -inf  ;;  %v1323_v27 = vpop.f32.mrb[1].mxu1 }
 0x22e   :  { %v206_v28 = vsel %vm205_vm7, %v204_v26, -inf }
 0x22f   :  { %207 = vmax.xlane.f32.xlu1 %v206_v28 }
 0x230   :  { %v372_v29 = vpop.f32.mrb[2].mxu1 }
 0x231   :  { %v376_v30 = vsel %vm1521_vm6, %v372_v29, -inf  ;;  %v1333_v31 = vpop.f32.mrb[3].mxu1 }
 0x232   :  { %v377_v32 = vsel %vm205_vm7, %v376_v30, -inf }
 0x233   :  { %378 = vmax.xlane.f32.xlu0 %v377_v32 }
 0x234   :  { %v545_v33 = vpop.f32.mrb[4].mxu1 }
 0x235   :  { %v549_v34 = vsel %vm1521_vm6, %v545_v33, -inf  ;;  %v1343_v35 = vpop.f32.mrb[5].mxu1 }
 0x236   :  { %v550_v36 = vsel %vm205_vm7, %v549_v34, -inf }
 0x237   :  { %551 = vmax.xlane.f32.xlu0 %v550_v36 }
 0x238   :  { %v713_v37 = vpop.f32.mrb[6].mxu1 }
 0x239   :  { %v717_v38 = vsel %vm1521_vm6, %v713_v37, -inf  ;;  %v1353_v39 = vpop.f32.mrb[7].mxu1 }
 0x23a   :  { %v718_v40 = vsel %vm205_vm7, %v717_v38, -inf }
 0x23b   :  { %719 = vmax.xlane.f32.xlu1 %v718_v40 }
 0x23c   :  { %v885_v41 = vpop.f32.mrb[8].mxu1 }
 0x23d   :  { %v889_v42 = vsel %vm1521_vm6, %v885_v41, -inf  ;;  %v1363_v43 = vpop.f32.mrb[9].mxu1 }
 0x23e   :  { %v890_v44 = vsel %vm205_vm7, %v889_v42, -inf }
 0x23f   :  { %891 = vmax.xlane.f32.xlu0 %v890_v44 }
 0x240   :  { %v1053_v45 = vpop.f32.mrb[10].mxu1 }
 0x241   :  { %v1057_v46 = vsel %vm1521_vm6, %v1053_v45, -inf  ;;  %v1373_v47 = vpop.f32.mrb[11].mxu1 }
 0x242   :  { %v1058_v48 = vsel %vm205_vm7, %v1057_v46, -inf }
 0x243   :  { %1059 = vmax.xlane.f32.xlu1 %v1058_v48 }
 0x254   :  { %388 = vrot.lane.b32.xlu1 %v1476_v9, %s1421_s26 }
 0x255   :  { %217 = vrot.lane.b32.xlu0 %v1476_v9, %s1422_s27 }
 0x258   :  { %561 = vrot.lane.b32.xlu1 %v1480_v10, %s1422_s27 }
 0x2bc   :  { %v208_v49 = vpop.xlane.xlu1 %207 }
 0x2bd   :  { %v209_v50 = vsub.f32 %v204_v26, %v208_v49 }
 0x2bf   :  { %v210_v51 = vmul.f32 1.442695, %v209_v50 }
 0x2c0   :  { %v379_v52 = vpop.xlane.xlu0 %378 }
 0x2c1   :  { %1392 = vpow2.f32 %v210_v51  ;;  %v380_v53 = vsub.f32 %v376_v30, %v379_v52 }
 0x2c3   :  { %v381_v54 = vmul.f32 1.442695, %v380_v53 }
 0x2c4   :  { %v552_v55 = vpop.xlane.xlu0 %551 }
 0x2c5   :  { %1394 = vpow2.f32 %v381_v54  ;;  %v553_v56 = vsub.f32 %v549_v34, %v552_v55 }
 0x2c7   :  { %v554_v57 = vmul.f32 1.442695, %v553_v56 }
 0x2c8   :  { %v720_v58 = vpop.xlane.xlu1 %719 }
 0x2c9   :  { %1396 = vpow2.f32 %v554_v57  ;;  %v721_v59 = vsub.f32 %v717_v38, %v720_v58  ;;  %v1280_v57 = vld [vmem:[%s1612_s4] ss:$0 sm:$0xff] }
 0x2cb   :  { %v1393_v60 = vpop.eup %1392  ;;  %v722_v61 = vmul.f32 1.442695, %v721_v59 }
 0x2cc   :  { %v892_v62 = vpop.xlane.xlu0 %891  ;;  %v212_v63 = vsel %vm205_vm7, %v1393_v60, 0.0 }
 0x2cd   :  { %1398 = vpow2.f32 %v722_v61  ;;  %213 = vadd.xlane.f32.xlu0 %v212_v63  ;;  %v893_v15 = vsub.f32 %v889_v42, %v892_v62 }
 0x2cf   :  { %v1395_v0 = vpop.eup %1394  ;;  %v894_v16 = vmul.f32 1.442695, %v893_v15 }
 0x2d0   :  { %v1060_v1 = vpop.xlane.xlu1 %1059  ;;  %v218_v2 = vpop.permute.xlu0 %217  ;;  %v383_v4 = vsel %vm205_vm7, %v1395_v0, 0.0 }
 0x2d1   :  { %v1061_v5 = vsub.f32 %v1057_v46, %v1060_v1  ;;  %384 = vadd.xlane.f32.xlu1 %v383_v4  ;;  %1325 = vmatpush3.msk.msra.mxu0 %vm223_vm8, %v218_v2 }
 0x2d2   :  { %1334 = vmatprep.subr.mxu0 %v1416_v3 }
 0x2d3   :  { %v1397_v6 = vpop.eup %1396  ;;  %v1062_v7 = vmul.f32 1.442695, %v1061_v5 }
 0x2d4   :  { %v556_v8 = vsel %vm205_vm7, %v1397_v6, 0.0  ;;  %v389_v19 = vpop.permute.xlu1 %388 }
 0x2d5   :  { %1400 = vpow2.f32 %v1062_v7  ;;  %557 = vadd.xlane.f32.xlu0 %v556_v8 }
 0x2d6   :  { %1402 = vpow2.f32 %v894_v16 }
 0x2d7   :  { %v1399_v9 = vpop.eup %1398 }
 0x2d8   :  { %v724_v12 = vsel %vm205_vm7, %v1399_v9, 0.0  ;;  %v562_v20 = vpop.permute.xlu1 %561 }
 0x2d9   :  { %725 = vadd.xlane.f32.xlu1 %v724_v12 }
 0x2df   :  { %v1401_v13 = vpop.eup %1400 }
 0x2e0   :  { %v1064_v14 = vsel %vm205_vm7, %v1401_v13, 0.0  ;;  %v1403_v17 = vpop.eup %1402 }
 0x2e1   :  { %1065 = vadd.xlane.f32.xlu1 %v1064_v14  ;;  %v896_v18 = vsel %vm205_vm7, %v1403_v17, 0.0 }
 0x2eb   :  { %729 = vrot.lane.b32.xlu0 %v1480_v10, %s1421_s26 }
 0x2f2   :  { %901 = vrot.lane.b32.xlu1 %v1486_v11, %s1422_s27 }
 0x30a   :  { %897 = vadd.xlane.f32.xlu0 %v896_v18 }
 0x320   :  { %1069 = vrot.lane.b32.xlu0 %v1486_v11, %s1421_s26 }
 0x35a   :  { %v214_v21 = vpop.xlane.xlu0 %213 }
 0x35b   :  { %1404 = vrcp.f32 %v214_v21 }
 0x35e   :  { %v385_v22 = vpop.xlane.xlu1 %384 }
 0x35f   :  { %1406 = vrcp.f32 %v385_v22 }
 0x362   :  { %v558_v10 = vpop.xlane.xlu0 %557 }
 0x363   :  { %1408 = vrcp.f32 %v558_v10 }
 0x365   :  { %v1405_v23 = vpop.eup %1404 }
 0x366   :  { %v216_v24 = vmul.f32 %v1405_v23, %v1393_v60  ;;  %v726_v25 = vpop.xlane.xlu1 %725  ;;  %v730_v30 = vpop.permute.xlu0 %729 }
 0x367   :  { %1410 = vrcp.f32 %v726_v25 }
 0x368   :  { %1327 = vmatmul.mubr.msk.f32.vlgmr.msra.gmra.mrb[2].mxu0 %vm219_vm9, %v216_v24 }
 0x369   :  { %v1407_v26 = vpop.eup %1406  ;;  %1335 = vmatpush3.msk.msra.mxu0 %vm223_vm8, %v389_v19  ;;  %1336 = vmatprep.mubr.msk.f32.mxu0 %vm1417_vm3, %v1416_v3 }
 0x36a   :  { %v387_v11 = vmul.f32 %v1407_v26, %v1395_v0  ;;  %1344 = vmatprep.subr.mxu0 %v1416_v3 }
 0x36c   :  { %1337 = vmatmul.mubr.msk.f32.vlgmr.msra.gmra.mrb[4].mxu0 %vm219_vm9, %v387_v11 }
 0x36d   :  { %v1409_v27 = vpop.eup %1408  ;;  %1345 = vmatpush3.msk.msra.mxu0 %vm223_vm8, %v562_v20  ;;  %1346 = vmatprep.mubr.msk.f32.mxu0 %vm1417_vm3, %v1416_v3 }
 0x36e   :  { %v560_v28 = vmul.f32 %v1409_v27, %v1397_v6  ;;  %v1066_v29 = vpop.xlane.xlu1 %1065  ;;  %1354 = vmatprep.subr.mxu0 %v1416_v3 }
 0x370   :  { %1347 = vmatmul.mubr.msk.f32.vlgmr.msra.gmra.mrb[6].mxu0 %vm219_vm9, %v560_v28 }
 0x371   :  { %v1411_v31 = vpop.eup %1410  ;;  %1355 = vmatpush3.msk.msra.mxu0 %vm223_vm8, %v730_v30  ;;  %1356 = vmatprep.mubr.msk.f32.mxu0 %vm1417_vm3, %v1416_v3 }
 0x372   :  { %v728_v32 = vmul.f32 %v1411_v31, %v1399_v9  ;;  %v902_v33 = vpop.permute.xlu1 %901  ;;  %1364 = vmatprep.subr.mxu0 %v1416_v3 }
 0x374   :  { %1357 = vmatmul.mubr.msk.f32.vlgmr.msra.gmra.mrb[8].mxu0 %vm219_vm9, %v728_v32 }
 0x375   :  { %1365 = vmatpush3.msk.msra.mxu0 %vm223_vm8, %v902_v33  ;;  %1366 = vmatprep.mubr.msk.f32.mxu0 %vm1417_vm3, %v1416_v3 }
 0x376   :  { %1374 = vmatprep.subr.mxu0 %v1416_v3 }
 0x397   :  { %v898_v34 = vpop.xlane.xlu0 %897 }
 0x398   :  { %1412 = vrcp.f32 %v898_v34 }
 0x399   :  { %1414 = vrcp.f32 %v1066_v29 }
 0x39b   :  { %v1070_v38 = vpop.permute.xlu0 %1069 }
 0x3a2   :  { %v1413_v35 = vpop.eup %1412 }
 0x3a3   :  { %v900_v36 = vmul.f32 %v1413_v35, %v1403_v17  ;;  %v1415_v37 = vpop.eup %1414 }
 0x3a4   :  { %v1068_v39 = vmul.f32 %v1415_v37, %v1401_v13 }
 0x3a5   :  { %1367 = vmatmul.mubr.msk.f32.vlgmr.msra.gmra.mrb[10].mxu0 %vm219_vm9, %v900_v36 }
 0x3a6   :  { %1375 = vmatpush3.msk.msra.mxu0 %vm223_vm8, %v1070_v38  ;;  %1376 = vmatprep.mubr.msk.f32.mxu0 %vm1417_vm3, %v1416_v3  ;;  %v1153_v3 = vld [vmem:[%s1611_s3] sm:$0x3f] }
 0x3a7   :  { %1379 = vmatprep.subr.msk.mxu1 %vm37_vm0, %v1153_v3 }
 0x3a8   :  { %1380 = vmatpush3.msk.msra.mxu1 %vm37_vm0, %v1153_v3 }
 0x3a9   :  { %1377 = vmatmul.mubr.msk.f32.vlgmr.msra.gmra.mrb[12].mxu0 %vm219_vm9, %v1068_v39 }
 0x43b   :  { %v292_v40 = vpop.f32.mrb[2].mxu0 }
 0x43c   :  { %297 = vst.msk [vmem:[#allocation3] sm:$0xf] %vm296_vm10, %v292_v40  ;;  %v1328_v41 = vpop.f32.mrb[3].mxu0 }
 0x43f   :  { %v461_v42 = vpop.f32.mrb[4].mxu0 }
 0x440   :  { %466 = vrot.lane.b32.xlu1 %v461_v42, %s1423_s28  ;;  %v1338_v43 = vpop.f32.mrb[5].mxu0 }
 0x443   :  { %v634_v44 = vpop.f32.mrb[6].mxu0 }
 0x444   :  { %638 = vst.msk [vmem:[#allocation3 + $0x4] sm:$0xf] %vm296_vm10, %v634_v44  ;;  %v1348_v45 = vpop.f32.mrb[7].mxu0 }
 0x447   :  { %v802_v46 = vpop.f32.mrb[8].mxu0 }
 0x448   :  { %807 = vrot.lane.b32.xlu0 %v802_v46, %s1423_s28  ;;  %v1358_v47 = vpop.f32.mrb[9].mxu0 }
 0x478   :  { %v974_v48 = vpop.f32.mrb[10].mxu0 }
 0x479   :  { %978 = vst.msk [vmem:[#allocation3 + $0x8] sm:$0xf] %vm296_vm10, %v974_v48  ;;  %v1368_v49 = vpop.f32.mrb[11].mxu0 }
 0x47c   :  { %v1142_v50 = vpop.f32.mrb[12].mxu0 }
 0x47d   :  { %1147 = vrot.lane.b32.xlu1 %v1142_v50, %s1423_s28  ;;  %v1378_v51 = vpop.f32.mrb[13].mxu0 }
 0x4b2   :  { %v467_v52 = vpop.permute.xlu1 %466 }
 0x4b3   :  { %470 = vst.msk [vmem:[#allocation3] sm:$0xf] %vm469_vm11, %v467_v52 }
 0x4ba   :  { %v808_v53 = vpop.permute.xlu0 %807 }
 0x4bb   :  { %810 = vst.msk [vmem:[#allocation3 + $0x4] sm:$0xf] %vm469_vm11, %v808_v53 }
 0x4c2   :  { %v1151_v54 = vld [vmem:[#allocation3] sm:$0xff] }
 0x4c3   :  { %1381 = vmatprep.mubr.msk.f32.mxu1 %vm30_vm1, %v1151_v54 }
 0x4ef   :  { %v1148_v55 = vpop.permute.xlu1 %1147 }
 0x4f0   :  { %1150 = vst.msk [vmem:[#allocation3 + $0x8] sm:$0xf] %vm469_vm11, %v1148_v55 }
 0x4f7   :  { %v1152_v56 = vld [vmem:[#allocation3 + $0x8] sm:$0xf] }
 0x4f8   :  { %1382 = vmatmul.mubr.msk.f32.vlgmr.msra.gmra.mrb[12].mxu1 %vm30_vm1, %v1152_v56 }
 0x5cb   :  { %v1383_v58 = vpop.f32.mrb[12].mxu1 }
 0x5cc   :  { %v1242_v59 = vadd.f32 %v1383_v58, %v1280_v57  ;;  %v1236_v60 = vpop.f32.mrb[13].mxu1 }
 0x5cd   :  { %v1237_v61 = vadd.f32 %v1280_v57, %v1236_v60 }
 0x5ce   :  { %1247 = vst.msk [vmem:[%s1613_s5 + $0x8] sm:$0xf] %vm1246_vm12, %v1242_v59 }
 0x5cf   :  { %1245 = vst.msk [vmem:[%s1613_s5] sm:$0xff] %vm30_vm1, %v1237_v61 }

</bundles_post_ra>
